<compile_context>
chip_gen: v7x
topology: tpu7x:2x2x1
jax: 0.10.0
libtpu: 0.0.40
codegen_flags: <defaults>
</compile_context>

<pallas_src>
import functools

import jax
import jax.numpy as jnp
from jax.experimental import pallas as pl
from jax.experimental.pallas import tpu as pltpu


def _round_up(x, m):
    return ((x + m - 1) // m) * m


def _cl4srec_main_loss_kernel(u_ref, pos_ref, neg_ref, sel_ref, out_ref, *,
                              n_rows, tile_n, sub_n, num_neg):
    """One grid step = tile_n batch rows.

    The BlockSpec tile is large (big contiguous DMAs, low per-step overhead);
    compute walks it in sub_n-row chunks so f32 temporaries stay small.
    """
    sel = sel_ref[...]                                   # (K*D, 128) f32, resident
    row0 = pl.program_id(0) * tile_n
    num_sub = tile_n // sub_n                            # static, exact

    lane = jax.lax.broadcasted_iota(jnp.int32, (sub_n, 128), 1)
    neg_lane_mask = lane < num_neg                       # (sub_n, 128)

    def body(s, acc):
        off = pl.multiple_of(s * sub_n, sub_n)
        u = u_ref[pl.ds(off, sub_n), :].astype(jnp.float32)     # (S, D)
        p = pos_ref[pl.ds(off, sub_n), :].astype(jnp.float32)   # (S, D)
        ng = neg_ref[pl.ds(off, sub_n), :].astype(jnp.float32)  # (S, K*D)

        # Positive score: one cross-lane reduce.
        pos_sc = jnp.sum(u * p, axis=1, keepdims=True)          # (S, 1)

        # All K negative scores in ONE MXU matmul:
        #   neg_sc[t, k] = sum_d u[t, d] * ng[t, k*D + d]
        if num_neg == 1:
            uu = u
        else:
            uu = jnp.concatenate([u] * num_neg, axis=1)         # (S, K*D)
        neg_sc = jnp.dot(uu * ng, sel,
                         preferred_element_type=jnp.float32,
                         precision=jax.lax.Precision.HIGHEST)   # (S, 128)
        neg_sc = jnp.where(neg_lane_mask, neg_sc, -jnp.inf)     # pad lanes -> -inf

        # Stable log-sum-exp over {pos, neg_0..neg_{K-1}}.
        m = jnp.maximum(pos_sc, jnp.max(neg_sc, axis=1, keepdims=True))    # (S,1)
        denom = (jnp.exp(pos_sc - m)
                 + jnp.sum(jnp.exp(neg_sc - m), axis=1, keepdims=True))    # (S,1)
        loss = -pos_sc + m + jnp.log(denom)                                # (S,1)

        # Mask rows past the true batch size (ragged last tile / OOB block
        # rows). Mask BEFORE summing — OOB rows may hold inf/NaN garbage.
        rows = row0 + off + jax.lax.broadcasted_iota(jnp.int32, (sub_n, 1), 0)
        loss = jnp.where(rows < n_rows, loss, 0.0)
        return acc + jnp.sum(loss, axis=0, keepdims=True)                  # (1,1)

    tile_sum = jax.lax.fori_loop(0, num_sub, body,
                                 jnp.zeros((1, 1), jnp.float32))

    # Lane-dense (1, 8, 128) slab: full unmasked vst, grid axis stays parallel.
    out_ref[...] = jnp.broadcast_to(tile_sum.reshape(1, 1, 1), out_ref.shape)


def _pick_tiles(n, d, kd, u_isz, p_isz, neg_isz):
    """Choose (outer DMA tile rows, inner compute sub-chunk rows)."""
    n_pad = _round_up(max(n, 1), 8)

    # Inner sub-chunk: keep the ~4 (sub_n, K*D) f32 temporaries under ~3 MiB.
    sub_n = (3 << 20) // max(16 * kd, 1)
    sub_n = max(8, min(512, (sub_n // 8) * 8))
    sub_n = min(sub_n, n_pad)

    # Outer tile: double-buffered (u + pos + neg) inputs under ~20 MiB total,
    # and keep >= 2 grid steps when the batch allows so the "parallel" axis
    # can be split across both v7x TensorCores.
    per_row = d * u_isz + d * p_isz + kd * neg_isz
    tile_n = (20 << 20) // max(2 * per_row, 1)
    tile_n = min(tile_n, 32768)
    tile_n = min(tile_n, _round_up(pl.cdiv(n_pad, 2), sub_n))
    tile_n = max(sub_n, (tile_n // sub_n) * sub_n)
    return int(tile_n), int(sub_n)


def cl4srec_main_loss(user_repr, pos_item_repr, neg_item_reprs):
    """Pallas equivalent of CL4SRecMainLoss.forward.

    Args:
      user_repr:      (N, D) float array
      pos_item_repr:  (N, D) float array
      neg_item_reprs: (N, K, D) float array (or (N, D) for a single negative)
    Returns:
      scalar f32 loss
    """
    if neg_item_reprs.ndim == 2:
        neg_item_reprs = neg_item_reprs[:, None, :]

    N, D = user_repr.shape
    K = neg_item_reprs.shape[1]
    KD = K * D

    # (N, K, D) -> (N, K*D): free contiguous reshape; lane-dense negative tile.
    neg_flat = neg_item_reprs.reshape(N, KD)

    u_isz = jnp.dtype(user_repr.dtype).itemsize
    p_isz = jnp.dtype(pos_item_repr.dtype).itemsize
    n_isz = jnp.dtype(neg_flat.dtype).itemsize
    tile_n, sub_n = _pick_tiles(N, D, KD, u_isz, p_isz, n_isz)
    num_tiles = pl.cdiv(N, tile_n)

    # Segment-sum selection matrix: sel[r, k] = 1 iff r // D == k (k < K).
    sel = (jnp.arange(KD, dtype=jnp.int32)[:, None] // D
           == jnp.arange(128, dtype=jnp.int32)[None, :]).astype(jnp.float32)

    kernel = functools.partial(
        _cl4srec_main_loss_kernel,
        n_rows=N, tile_n=tile_n, sub_n=sub_n, num_neg=K)

    # Double-buffered inputs + resident sel block + output slabs + headroom
    # for in-kernel temporaries.  Explicit so v5e's 16 MiB default scoped
    # limit doesn't force small tiles; capped well under v7x's 64 MiB VMEM.
    dbl_in = 2 * tile_n * (D * u_isz + D * p_isz + KD * n_isz)
    vmem_limit = int(min(max(dbl_in + 2 * KD * 128 * 4 + (16 << 20), 32 << 20),
                         56 << 20))

    partials = pl.pallas_call(
        kernel,
        out_shape=jax.ShapeDtypeStruct((num_tiles, 8, 128), jnp.float32),
        grid_spec=pltpu.PrefetchScalarGridSpec(
            num_scalar_prefetch=0,
            grid=(num_tiles,),
            in_specs=[
                pl.BlockSpec((tile_n, D), lambda i: (i, 0)),
                pl.BlockSpec((tile_n, D), lambda i: (i, 0)),
                pl.BlockSpec((tile_n, KD), lambda i: (i, 0)),
                pl.BlockSpec((KD, 128), lambda i: (0, 0)),   # constant -> fetched once
            ],
            out_specs=pl.BlockSpec((1, 8, 128), lambda i: (i, 0, 0)),
        ),
        compiler_params=pltpu.CompilerParams(
            dimension_semantics=("parallel",),   # v7x: shard tiles across both TCs
            vmem_limit_bytes=vmem_limit,
        ),
    )(user_repr, pos_item_repr, neg_flat, sel)

    # Each slab holds the tile's partial sum replicated; finish the mean here.
    return jnp.sum(partials[:, 0, 0]) / jnp.float32(N)


def cl4srec_main_loss_ref(user_repr, pos_item_repr, neg_item_reprs):
    """Pure-JAX reference mirroring the PyTorch module."""
    if neg_item_reprs.ndim == 2:
        neg_item_reprs = neg_item_reprs[:, None, :]
    pos_scores = jnp.sum(user_repr * pos_item_repr, axis=1)
    neg_scores = jnp.sum(user_repr[:, None, :] * neg_item_reprs, axis=2)
    pos_exp = jnp.exp(pos_scores)
    neg_exp_sum = jnp.sum(jnp.exp(neg_scores), axis=1)
    loss = -pos_scores + jnp.log(pos_exp + neg_exp_sum)
    return jnp.mean(loss)


if __name__ == "__main__":
    key = jax.random.PRNGKey(0)

    # Test 1: small batch, N users, D hidden, K negatives (single tile).
    N, D, K = 8, 32, 4
    k_u, k_p, k_n, k2, k3 = jax.random.split(key, 5)
    user_repr = jax.random.normal(k_u, (N, D), dtype=jnp.float32) * 0.5
    pos_item_repr = jax.random.normal(k_p, (N, D), dtype=jnp.float32) * 0.5
    neg_item_reprs = jax.random.normal(k_n, (N, K, D), dtype=jnp.float32) * 0.5

    loss = jax.block_until_ready(
        cl4srec_main_loss(user_repr, pos_item_repr, neg_item_reprs))
    ref = cl4srec_main_loss_ref(user_repr, pos_item_repr, neg_item_reprs)
    assert jnp.allclose(loss, ref, rtol=1e-4, atol=1e-5), (loss, ref)

    # Test 2: ragged batch, K*D not a multiple of 128 (exercises row masking).
    N2, D2, K2 = 13, 32, 3
    k_u2, k_p2, k_n2 = jax.random.split(k2, 3)
    u2 = jax.random.normal(k_u2, (N2, D2), dtype=jnp.float32) * 0.5
    p2 = jax.random.normal(k_p2, (N2, D2), dtype=jnp.float32) * 0.5
    n2 = jax.random.normal(k_n2, (N2, K2, D2), dtype=jnp.float32) * 0.5
    loss2 = jax.block_until_ready(cl4srec_main_loss(u2, p2, n2))
    ref2 = cl4srec_main_loss_ref(u2, p2, n2)
    assert jnp.allclose(loss2, ref2, rtol=1e-4, atol=1e-5), (loss2, ref2)

    # Test 3: larger ragged batch (multi-tile grid + inner sub-chunk loop).
    N3, D3, K3 = 2050, 32, 4
    k_u3, k_p3, k_n3 = jax.random.split(k3, 3)
    u3 = jax.random.normal(k_u3, (N3, D3), dtype=jnp.float32) * 0.5
    p3 = jax.random.normal(k_p3, (N3, D3), dtype=jnp.float32) * 0.5
    n3 = jax.random.normal(k_n3, (N3, K3, D3), dtype=jnp.float32) * 0.5
    loss3 = jax.block_until_ready(cl4srec_main_loss(u3, p3, n3))
    ref3 = cl4srec_main_loss_ref(u3, p3, n3)
    assert jnp.allclose(loss3, ref3, rtol=1e-4, atol=1e-4), (loss3, ref3)

    print("KERNEL_OK")
</pallas_src>

<mosaic_0001>
module attributes {stable_mosaic.version = 11 : i64} {
  func.func @_cl4srec_main_loss_kernel(%arg0: i32, %arg1: memref<8x32xf32, #tpu.memory_space<vmem>>, %arg2: memref<8x32xf32, #tpu.memory_space<vmem>>, %arg3: memref<8x128xf32, #tpu.memory_space<vmem>>, %arg4: memref<128x128xf32, #tpu.memory_space<vmem>>, %arg5: memref<1x8x128xf32, #tpu.memory_space<vmem>>) attributes {dimension_semantics = [#tpu.dimension_semantics<parallel>], iteration_bounds = array<i64: 1>, scalar_prefetch = 0 : i64, scratch_operands = 0 : i64, tpu.core_type = #tpu.core_type<tc>, window_params = [{transform_indices = @transform_0, window_bounds = array<i64: 8, 32>}, {transform_indices = @transform_1, window_bounds = array<i64: 8, 32>}, {transform_indices = @transform_2, window_bounds = array<i64: 8, 128>}, {pipeline_mode = #tpu.pipeline_mode<synchronous>, transform_indices = @transform_3, window_bounds = array<i64: 128, 128>}, {transform_indices = @transform_4, window_bounds = array<i64: 1, 8, 128>}]} {
    %c0 = arith.constant 0 : index
    %c0_0 = arith.constant 0 : index
    %0 = vector.load %arg4[%c0, %c0_0] : memref<128x128xf32, #tpu.memory_space<vmem>>, vector<128x128xf32>
    %c8_i32 = arith.constant 8 : i32
    %1 = arith.muli %arg0, %c8_i32 : i32
    %2 = tpu.iota {dimensions = array<i32: 1>} : vector<8x128xi32>
    %c4_i32 = arith.constant 4 : i32
    %3 = vector.broadcast %c4_i32 : i32 to vector<8x128xi32>
    %4 = arith.cmpi slt, %2, %3 : vector<8x128xi32>
    %cst = arith.constant 0.000000e+00 : f32
    %5 = vector.broadcast %cst : f32 to vector<1x1xf32>
    %c0_i32 = arith.constant 0 : i32
    %c8_i32_1 = arith.constant 8 : i32
    %6 = arith.muli %c0_i32, %c8_i32_1 : i32
    %7 = tpu.assume_multiple %6, 8 : i32
    %8 = arith.index_cast %7 : i32 to index
    %c0_2 = arith.constant 0 : index
    %9 = vector.load %arg1[%8, %c0_2] : memref<8x32xf32, #tpu.memory_space<vmem>>, vector<8x32xf32>
    %10 = arith.index_cast %7 : i32 to index
    %c0_3 = arith.constant 0 : index
    %11 = vector.load %arg2[%10, %c0_3] : memref<8x32xf32, #tpu.memory_space<vmem>>, vector<8x32xf32>
    %12 = arith.index_cast %7 : i32 to index
    %c0_4 = arith.constant 0 : index
    %13 = vector.load %arg3[%12, %c0_4] : memref<8x128xf32, #tpu.memory_space<vmem>>, vector<8x128xf32>
    %14 = arith.mulf %9, %11 : vector<8x32xf32>
    %cst_5 = arith.constant dense<0.000000e+00> : vector<8xf32>
    %15 = vector.multi_reduction <add>, %14, %cst_5 [1] : vector<8x32xf32> to vector<8xf32>
    %16 = vector.shape_cast %15 : vector<8xf32> to vector<8x1xf32>
    %17 = tpu.concatenate %9, %9, %9, %9 in 1 : vector<8x32xf32>, vector<8x32xf32>, vector<8x32xf32>, vector<8x32xf32> -> vector<8x128xf32>
    %18 = arith.mulf %17, %13 : vector<8x128xf32>
    %cst_6 = arith.constant dense<0.000000e+00> : vector<8x128xf32>
    %19 = tpu.matmul %18, %0, %cst_6 {dimension_numbers = #tpu.dot_dimension_numbers<[1], [0], [0], [1], [0, 0, 1, 1], [], []>, precision = #tpu.contract_precision<fp32>} : vector<8x128xf32>, vector<128x128xf32>, vector<8x128xf32> -> vector<8x128xf32>
    %cst_7 = arith.constant 0xFF800000 : f32
    %20 = vector.broadcast %cst_7 : f32 to vector<8x128xf32>
    %21 = arith.select %4, %19, %20 : vector<8x128xi1>, vector<8x128xf32>
    %cst_8 = arith.constant dense<0xFF800000> : vector<8xf32>
    %22 = vector.multi_reduction <maximumf>, %21, %cst_8 [1] : vector<8x128xf32> to vector<8xf32>
    %23 = vector.shape_cast %22 : vector<8xf32> to vector<8x1xf32>
    %24 = arith.maximumf %16, %23 : vector<8x1xf32>
    %25 = arith.subf %16, %24 : vector<8x1xf32>
    %26 = math.exp %25 : vector<8x1xf32>
    %27 = vector.broadcast %24 : vector<8x1xf32> to vector<8x128xf32>
    %28 = arith.subf %21, %27 : vector<8x128xf32>
    %29 = math.exp %28 : vector<8x128xf32>
    %cst_9 = arith.constant dense<0.000000e+00> : vector<8xf32>
    %30 = vector.multi_reduction <add>, %29, %cst_9 [1] : vector<8x128xf32> to vector<8xf32>
    %31 = vector.shape_cast %30 : vector<8xf32> to vector<8x1xf32>
    %32 = arith.addf %26, %31 : vector<8x1xf32>
    %cst_10 = arith.constant 0.000000e+00 : f32
    %33 = vector.broadcast %cst_10 : f32 to vector<8x1xf32>
    %34 = arith.subf %33, %16 : vector<8x1xf32>
    %35 = arith.addf %34, %24 : vector<8x1xf32>
    %36 = math.log %32 : vector<8x1xf32>
    %37 = arith.addf %35, %36 : vector<8x1xf32>
    %38 = arith.addi %1, %7 : i32
    %39 = tpu.iota {dimensions = array<i32: 0>} : vector<8x1xi32>
    %40 = vector.broadcast %38 : i32 to vector<8x1xi32>
    %41 = arith.addi %40, %39 : vector<8x1xi32>
    %c8_i32_11 = arith.constant 8 : i32
    %42 = vector.broadcast %c8_i32_11 : i32 to vector<8x1xi32>
    %43 = arith.cmpi slt, %41, %42 : vector<8x1xi32>
    %cst_12 = arith.constant 0.000000e+00 : f32
    %44 = vector.broadcast %cst_12 : f32 to vector<8x1xf32>
    %45 = arith.select %43, %37, %44 : vector<8x1xi1>, vector<8x1xf32>
    %cst_13 = arith.constant dense<0.000000e+00> : vector<1xf32>
    %46 = vector.multi_reduction <add>, %45, %cst_13 [0] : vector<8x1xf32> to vector<1xf32>
    %47 = vector.shape_cast %46 : vector<1xf32> to vector<1x1xf32>
    %48 = arith.addf %5, %47 : vector<1x1xf32>
    %c1_i32 = arith.constant 1 : i32
    %49 = vector.shape_cast %48 : vector<1x1xf32> to vector<1x1x1xf32>
    %50 = vector.shape_cast %49 : vector<1x1x1xf32> to vector<1x1x1xf32>
    %51 = vector.broadcast %50 : vector<1x1x1xf32> to vector<1x8x128xf32>
    %c0_14 = arith.constant 0 : index
    %c0_15 = arith.constant 0 : index
    %c0_16 = arith.constant 0 : index
    %52 = vector.load %arg5[%c0_14, %c0_15, %c0_16] : memref<1x8x128xf32, #tpu.memory_space<vmem>>, vector<1x8x128xf32>
    tpu.vector_store %arg5[%c0_14, %c0_15, %c0_16], %51 {strides = array<i32>} : memref<1x8x128xf32, #tpu.memory_space<vmem>>, vector<1x8x128xf32>,
    return
  }
  func.func @transform_0(%arg0: i32) -> (i32, i32) {
    %c0_i32 = arith.constant 0 : i32
    %c0_i32_0 = arith.constant 0 : i32
    return %arg0, %c0_i32 : i32, i32
  }
  func.func @transform_1(%arg0: i32) -> (i32, i32) {
    %c0_i32 = arith.constant 0 : i32
    %c0_i32_0 = arith.constant 0 : i32
    return %arg0, %c0_i32 : i32, i32
  }
  func.func @transform_2(%arg0: i32) -> (i32, i32) {
    %c0_i32 = arith.constant 0 : i32
    %c0_i32_0 = arith.constant 0 : i32
    return %arg0, %c0_i32 : i32, i32
  }
  func.func @transform_3(%arg0: i32) -> (i32, i32) {
    %c0_i32 = arith.constant 0 : i32
    %c0_i32_0 = arith.constant 0 : i32
    %c0_i32_1 = arith.constant 0 : i32
    return %c0_i32, %c0_i32_0 : i32, i32
  }
  func.func @transform_4(%arg0: i32) -> (i32, i32, i32) {
    %c0_i32 = arith.constant 0 : i32
    %c0_i32_0 = arith.constant 0 : i32
    %c0_i32_1 = arith.constant 0 : i32
    return %arg0, %c0_i32, %c0_i32_0 : i32, i32, i32
  }
}

</mosaic_0001>

<bundles_post_ra>
// kernel: tpu_custom_call.1
= control target key start
LH: loop header
LB: loop body
LE: loop exit
PB: predicated region body
PF: predicated region fallthrough
CT: control target
= control target key end

     0   :  { %9 = vsyncpa [#allocation3], 0  ;;  %s1826_s0 = inlined_call_operand.hbm [shape: f32[8,32], index: 0, kind: input, shape index: {}]   ;;  %s1827_s1 = inlined_call_operand.hbm [shape: f32[8,32], index: 1, kind: input, shape index: {}]   ;;  %s1828_s2 = inlined_call_operand.hbm [shape: f32[8,128], index: 2, kind: input, shape index: {}]   ;;  %s1829_s3 = inlined_call_operand.hbm [shape: f32[128,128], index: 3, kind: input, shape index: {}]   ;;  %s1830_s4 = inlined_call_operand.hbm [shape: f32[1,8,128], index: 4, kind: output, shape index: {}]  }
   0x1   :  { %10 = vsyncpa [#allocation6], 0 }
   0x2   :  { %11 = vsyncpa [#allocation9], 0 }
   0x3   :  { %12 = vsyncpa [#allocation4], 0  ;;  %s1404_s15 = smov [#allocation5]   ;;  %s1405_s17 = smov [#allocation2]  }
   0x4   :  { %s29_s16 = sshll.u32 %s1404_s15, 4  ;;  %s19_s18 = sshll.u32 %s1405_s17, 4  ;;  %s30_s16 = int_to_ptr.vmem [resolvable:$true] %s29_s16  ;;  %s20_s18 = int_to_ptr.vmem [resolvable:$true] %s19_s18 }
   0x5   :  { %s1286_s21 = scalar_lea.hbm %s1827_s1, 128 }
   0x6   :  { %p1287_p0 = scmp.ne.s32.totalorder %s1827_s1, %s1286_s21  ;;  %p1290_p1 = scmp.lt.u32.totalorder %s1286_s21, %s1827_s1 }
   0x8   :  { %p1292_p2 = pnand %p1290_p1, %p1287_p0 }
   0xa   :  { %1295 = shalt.err (!%p1292_p2)
}
   0xb   :  { %s1296_s26 = scalar_lea.vmem %s30_s16, 128  ;;  %p1301_p4 = scmp.lt.s32.totalorder %s30_s16, %s30_s16 }
   0xc   :  { %p1297_p3 = scmp.ne.s32.totalorder %s30_s16, %s1296_s26  ;;  %p1302_p5 = scmp.lt.s32.totalorder %s1296_s26, %s1296_s26 }
   0xe   :  { %p1303_p6 = por %p1302_p5, %p1301_p4 }
  0x10   :  { %p1304_p7 = pnand %p1303_p6, %p1297_p3 }
  0x12   :  { %1307 = shalt.err (!%p1304_p7)
}
  0x13   :  { %32 = dma.hbm_to_vmem [thread:$0]  %s1827_s1, 128, %s30_s16, [#allocation6]  }
  0x14   :  { %s1308_s5 = scalar_lea.hbm %s1826_s0, 128 }
  0x15   :  { %p1309_p8 = scmp.ne.s32.totalorder %s1826_s0, %s1308_s5  ;;  %p1312_p9 = scmp.lt.u32.totalorder %s1308_s5, %s1826_s0 }
  0x17   :  { %p1314_p10 = pnand %p1312_p9, %p1309_p8 }
  0x19   :  { %1317 = shalt.err (!%p1314_p10)
}
  0x1a   :  { %s1318_s10 = scalar_lea.vmem %s20_s18, 128  ;;  %p1323_p12 = scmp.lt.s32.totalorder %s20_s18, %s20_s18 }
  0x1b   :  { %p1319_p11 = scmp.ne.s32.totalorder %s20_s18, %s1318_s10  ;;  %p1324_p13 = scmp.lt.s32.totalorder %s1318_s10, %s1318_s10 }
  0x1d   :  { %p1325_p0 = por %p1324_p13, %p1323_p12 }
  0x1f   :  { %p1326_p1 = pnand %p1325_p0, %p1319_p11 }
  0x21   :  { %1329 = shalt.err (!%p1326_p1)
}
  0x22   :  { %22 = dma.hbm_to_vmem [thread:$0]  %s1826_s0, 128, %s20_s18, [#allocation3]  }
  0x23   :  { %s1406_s12 = smov [#allocation7]   ;;  %s1407_s14 = smov [#allocation8]  }
  0x24   :  { %s39_s13 = sshll.u32 %s1406_s12, 4  ;;  %s48_s15 = sshll.u32 %s1407_s14, 4  ;;  %s40_s13 = int_to_ptr.vmem [resolvable:$true] %s39_s13  ;;  %s1466_s15 = int_to_ptr.vmem [resolvable:$true] %s48_s15 }
  0x25   :  { %s1330_s19 = scalar_lea.hbm %s1828_s2, 128 }
  0x26   :  { %p1331_p2 = scmp.ne.s32.totalorder %s1828_s2, %s1330_s19  ;;  %p1334_p3 = scmp.lt.u32.totalorder %s1330_s19, %s1828_s2 }
  0x28   :  { %p1336_p4 = pnand %p1334_p3, %p1331_p2 }
  0x2a   :  { %1339 = shalt.err (!%p1336_p4)
}
  0x2b   :  { %s1340_s0 = scalar_lea.vmem %s40_s13, 128  ;;  %p1345_p6 = scmp.lt.s32.totalorder %s40_s13, %s40_s13 }
  0x2c   :  { %p1341_p5 = scmp.ne.s32.totalorder %s40_s13, %s1340_s0  ;;  %p1346_p7 = scmp.lt.s32.totalorder %s1340_s0, %s1340_s0 }
  0x2e   :  { %p1347_p8 = por %p1346_p7, %p1345_p6 }
  0x30   :  { %p1348_p9 = pnand %p1347_p8, %p1341_p5 }
  0x32   :  { %1351 = shalt.err (!%p1348_p9)
}
  0x33   :  { %42 = dma.hbm_to_vmem [thread:$0]  %s1828_s2, 128, %s40_s13, [#allocation6]  }
  0x34   :  { %s1352_s27 = scalar_lea.hbm %s1829_s3, 2048 }
  0x35   :  { %p1353_p10 = scmp.ne.s32.totalorder %s1829_s3, %s1352_s27  ;;  %p1356_p11 = scmp.lt.u32.totalorder %s1352_s27, %s1829_s3 }
  0x37   :  { %p1358_p12 = pnand %p1356_p11, %p1353_p10 }
  0x39   :  { %1361 = shalt.err (!%p1358_p12)
}
  0x3a   :  { %s1362_s6 = scalar_lea.vmem %s1466_s15, 2048  ;;  %p1367_p0 = scmp.lt.s32.totalorder %s1466_s15, %s1466_s15 }
  0x3b   :  { %p1363_p13 = scmp.ne.s32.totalorder %s1466_s15, %s1362_s6  ;;  %p1368_p1 = scmp.lt.s32.totalorder %s1362_s6, %s1362_s6 }
  0x3d   :  { %p1369_p2 = por %p1368_p1, %p1367_p0 }
  0x3f   :  { %p1370_p3 = pnand %p1369_p2, %p1363_p13 }
  0x41   :  { %1373 = shalt.err (!%p1370_p3)
}
  0x42   :  { %s1408_s2 = smov 128   ;;  %s1409_s7 = smov 8  }
  0x43   :  { %54 = dma.hbm_to_vmem [thread:$0]  %s1829_s3, 2048, %s1466_s15, [#allocation9], %s1408_s2, %s1408_s2, %s1409_s7  }
  0x44   :  { %1396 = dma.done.wait [#allocation3], 128  }
  0x45   :  { %1397 = vsyncadd [#allocation3], 4294967168 }
  0x46   :  { %1398 = dma.done.wait [#allocation6], 256  }
  0x47   :  { %1399 = vsyncadd [#allocation6], 4294967040 }
  0x48   :  { %1400 = dma.done.wait [#allocation9], 2048  }
  0x49   :  { %1401 = vsyncadd [#allocation9], 4294965248  ;;  %v1410_v0 = vmov 0.0|0.0   ;;  %vm1411_vm0 = vmmov 0   ;;  %v1412_v1 = vmov 0.0   ;;  %v1503_v2 = vld [vmem:[#allocation2] sm:$0xff] }
  0x4a   :  { %1186 = vmatprep.subr.bf16.mxu0 %v1410_v0  ;;  %1114 = vmatprep.subr.bf16.mxu1 %v1410_v0  ;;  %v67_v3 = vld [vmem:[#allocation8] sm:$0xff]  ;;  %v68_v4 = vld [vmem:[#allocation8 + $0x8] sm:$0xff]  ;;  %s1413_s3 = smov 32   ;;  %s1414_s10 = smov 96   ;;  %v69_v7 = vld [vmem:[#allocation8 + $0x10] sm:$0xff]  ;;  %vm91_vm1 = vcmask 261120  }
  0x4b   :  { %1041 = vmatprep.mubr.msk.f32.mxu0 %vm1411_vm0, %v1412_v1  ;;  %936 = vmatprep.mubr.msk.f32.mxu1 %vm1411_vm0, %v1412_v1  ;;  %v112_v5 = vand.u32 4294901760, %v67_v3  ;;  %v115_v6 = vand.u32 4294901760, %v68_v4  ;;  %v70_v8 = vld [vmem:[#allocation8 + $0x18] sm:$0xff]  ;;  %v71_v9 = vld [vmem:[#allocation8 + $0x20] sm:$0xff]  ;;  %v118_v10 = vand.u32 4294901760, %v69_v7  ;;  %v72_v12 = vld [vmem:[#allocation8 + $0x28] sm:$0xff] }
  0x4c   :  { %96 = vrot.lane.b32.xlu0 %v1503_v2, %s1413_s3  ;;  %102 = vrot.lane.b32.xlu1 %v1503_v2, %s1414_s10  ;;  %v121_v11 = vand.u32 4294901760, %v70_v8  ;;  %v124_v13 = vand.u32 4294901760, %v71_v9  ;;  %v73_v14 = vld [vmem:[#allocation8 + $0x30] sm:$0xff]  ;;  %v74_v15 = vld [vmem:[#allocation8 + $0x38] sm:$0xff]  ;;  %v127_v19 = vand.u32 4294901760, %v72_v12  ;;  %v75_v20 = vld [vmem:[#allocation8 + $0x40] sm:$0xff] }
  0x4d   :  { %v1507_v16 = vpack.c.bf16 %v115_v6, %v112_v5  ;;  %v1509_v17 = vsub.f32 %v67_v3, %v112_v5  ;;  %v1511_v18 = vsub.f32 %v68_v4, %v115_v6  ;;  %v76_v21 = vld [vmem:[#allocation8 + $0x48] sm:$0xff]  ;;  %v1513_v22 = vld [vmem:[#allocation8 + $0x50] sm:$0xff]  ;;  %v1515_v23 = vsub.f32 %v69_v7, %v118_v10  ;;  %v1521_v26 = vld [vmem:[#allocation8 + $0x58] sm:$0xff]  ;;  %s1415_s1 = smov 64   ;;  %s1416_s11 = smov [#allocation10]  }
  0x4e   :  { %v1517_v24 = vsub.f32 %v70_v8, %v121_v11  ;;  %v1519_v25 = vsub.f32 %v71_v9, %v124_v13  ;;  %v1523_v27 = vld [vmem:[#allocation8 + $0x60] sm:$0xff]  ;;  %v1527_v28 = vpack.c.bf16 %v121_v11, %v118_v10  ;;  %v1529_v29 = vsub.f32 %v72_v12, %v127_v19  ;;  %v1534_v35 = vld [vmem:[#allocation8 + $0x68] sm:$0xff]  ;;  %v1543_v40 = vld [vmem:[#allocation8 + $0x70] sm:$0xff]  ;;  %s791_s12 = sshll.u32 %s1416_s11, 4  ;;  %s792_s12 = int_to_ptr.vmem [resolvable:$true] %s791_s12 }
  0x4f   :  { %1188 = vmatpush3.bf16.msra.mxu0 %v1507_v16  ;;  %v130_v30 = vand.u32 4294901760, %v73_v14  ;;  %v133_v31 = vand.u32 4294901760, %v74_v15  ;;  %1116 = vmatpush3.bf16.msra.mxu1 %v1507_v16  ;;  %v136_v32 = vand.u32 4294901760, %v75_v20  ;;  %v139_v33 = vand.u32 4294901760, %v76_v21  ;;  %v1545_v41 = vld [vmem:[#allocation8 + $0x78] sm:$0xff]  ;;  %s1374_s13 = scalar_lea.vmem %s792_s12, 128  ;;  %p1379_p5 = scmp.lt.s32.totalorder %s792_s12, %s792_s12 }
  0x50   :  { %99 = vrot.lane.b32.xlu0 %v1503_v2, %s1415_s1  ;;  %1189 = vmatprep.subr.bf16.mxu0 %v1410_v0  ;;  %v142_v34 = vand.u32 4294901760, %v1513_v22  ;;  %v145_v38 = vand.u32 4294901760, %v1521_v26  ;;  %v148_v39 = vand.u32 4294901760, %v1523_v27  ;;  %v1547_v42 = vpack.c.bf16 %v127_v19, %v124_v13  ;;  %p1375_p4 = scmp.ne.s32.totalorder %s792_s12, %s1374_s13  ;;  %p1380_p6 = scmp.lt.s32.totalorder %s1374_s13, %s1374_s13 }
  0x51   :  { %1117 = vmatprep.subr.bf16.mxu1 %v1410_v0  ;;  %v1537_v36 = vsub.f32 %v73_v14, %v130_v30  ;;  %v1539_v37 = vsub.f32 %v74_v15, %v133_v31  ;;  %v1549_v43 = vsub.f32 %v75_v20, %v136_v32  ;;  %v1551_v44 = vsub.f32 %v76_v21, %v139_v33 }
  0x52   :  { %v1557_v45 = vsub.f32 %v1513_v22, %v142_v34  ;;  %v1562_v46 = vsub.f32 %v1521_v26, %v145_v38  ;;  %v151_v47 = vand.u32 4294901760, %v1534_v35  ;;  %v1568_v48 = vsub.f32 %v1523_v27, %v148_v39  ;;  %p1381_p7 = por %p1380_p6, %p1379_p5 }
  0x53   :  { %1191 = vmatpush3.bf16.msra.mxu0 %v1527_v28  ;;  %1119 = vmatpush3.bf16.msra.mxu1 %v1527_v28  ;;  %v154_v49 = vand.u32 4294901760, %v1543_v40  ;;  %v157_v50 = vand.u32 4294901760, %v1545_v41  ;;  %v205_v51 = vand.u32 4294901760, %v1509_v17  ;;  %v212_v52 = vand.u32 4294901760, %v1511_v18 }
  0x54   :  { %1192 = vmatprep.subr.bf16.mxu0 %v1410_v0  ;;  %1120 = vmatprep.subr.bf16.mxu1 %v1410_v0  ;;  %v1577_v53 = vpack.c.bf16 %v133_v31, %v130_v30  ;;  %v1582_v54 = vsub.f32 %v1534_v35, %v151_v47  ;;  %v219_v55 = vand.u32 4294901760, %v1515_v23  ;;  %v226_v56 = vand.u32 4294901760, %v1517_v24  ;;  %p1382_p8 = pnand %p1381_p7, %p1375_p4 }
  0x55   :  { %v1586_v57 = vpack.c.bf16 %v139_v33, %v136_v32  ;;  %v1591_v58 = vsub.f32 %v1543_v40, %v154_v49  ;;  %v1596_v59 = vsub.f32 %v1545_v41, %v157_v50  ;;  %v1598_v60 = vpack.c.bf16 %v212_v52, %v205_v51 }
  0x56   :  { %v206_v61 = vsub.f32 %v1509_v17, %v205_v51  ;;  %v213_v62 = vsub.f32 %v1511_v18, %v212_v52  ;;  %v1603_v63 = vpack.c.bf16 %v226_v56, %v219_v55  ;;  %v220_v3 = vsub.f32 %v1515_v23, %v219_v55 }
  0x57   :  { %1194 = vmatpush3.bf16.msra.mxu0 %v1547_v42  ;;  %1122 = vmatpush3.bf16.msra.mxu1 %v1547_v42  ;;  %v227_v4 = vsub.f32 %v1517_v24, %v226_v56  ;;  %v233_v5 = vand.u32 4294901760, %v1519_v25  ;;  %v240_v6 = vand.u32 4294901760, %v1529_v29  ;;  %v247_v7 = vand.u32 4294901760, %v1537_v36 }
  0x58   :  { %1195 = vmatprep.subr.bf16.mxu0 %v1410_v0  ;;  %1123 = vmatprep.subr.bf16.mxu1 %v1410_v0  ;;  %v207_v8 = vand.u32 4294901760, %v206_v61  ;;  %v214_v9 = vand.u32 4294901760, %v213_v62  ;;  %v221_v10 = vand.u32 4294901760, %v220_v3  ;;  %v254_v11 = vand.u32 4294901760, %v1539_v37 }
  0x59   :  { %v228_v12 = vand.u32 4294901760, %v227_v4  ;;  %v1614_v13 = vpack.c.bf16 %v240_v6, %v233_v5  ;;  %v234_v14 = vsub.f32 %v1519_v25, %v233_v5  ;;  %v241_v15 = vsub.f32 %v1529_v29, %v240_v6 }
  0x5a   :  { %v1619_v19 = vpack.c.bf16 %v214_v9, %v207_v8  ;;  %v1621_v20 = vpack.c.bf16 %v254_v11, %v247_v7  ;;  %v248_v21 = vsub.f32 %v1537_v36, %v247_v7  ;;  %v255_v30 = vsub.f32 %v1539_v37, %v254_v11 }
  0x5b   :  { %1197 = vmatpush3.bf16.msra.mxu0 %v1577_v53  ;;  %1125 = vmatpush3.bf16.msra.mxu1 %v1577_v53  ;;  %v1627_v31 = vpack.c.bf16 %v228_v12, %v221_v10  ;;  %v235_v32 = vand.u32 4294901760, %v234_v14  ;;  %v242_v33 = vand.u32 4294901760, %v241_v15  ;;  %v261_v51 = vand.u32 4294901760, %v1549_v43 }
  0x5c   :  { %1198 = vmatprep.subr.bf16.mxu0 %v1410_v0  ;;  %1126 = vmatprep.subr.bf16.mxu1 %v1410_v0  ;;  %v249_v52 = vand.u32 4294901760, %v248_v21  ;;  %v256_v55 = vand.u32 4294901760, %v255_v30  ;;  %v268_v56 = vand.u32 4294901760, %v1551_v44  ;;  %v275_v61 = vand.u32 4294901760, %v1557_v45 }
  0x5d   :  { %v1637_v62 = vpack.c.bf16 %v145_v38, %v142_v34  ;;  %v1639_v3 = vpack.c.bf16 %v242_v33, %v235_v32  ;;  %v262_v4 = vsub.f32 %v1549_v43, %v261_v51  ;;  %v282_v5 = vand.u32 4294901760, %v1562_v46 }
  0x5e   :  { %v1644_v6 = vpack.c.bf16 %v256_v55, %v249_v52  ;;  %v1646_v7 = vpack.c.bf16 %v268_v56, %v261_v51  ;;  %v269_v8 = vsub.f32 %v1551_v44, %v268_v56  ;;  %v276_v22 = vsub.f32 %v1557_v45, %v275_v61 }
  0x5f   :  { %1200 = vmatpush3.bf16.msra.mxu0 %v1586_v57  ;;  %1128 = vmatpush3.bf16.msra.mxu1 %v1586_v57  ;;  %v263_v26 = vand.u32 4294901760, %v262_v4  ;;  %v1652_v34 = vpack.c.bf16 %v282_v5, %v275_v61  ;;  %v283_v38 = vsub.f32 %v1562_v46, %v282_v5  ;;  %v289_v11 = vand.u32 4294901760, %v1568_v48 }
  0x60   :  { %1201 = vmatprep.subr.bf16.mxu0 %v1410_v0  ;;  %1129 = vmatprep.subr.bf16.mxu1 %v1410_v0  ;;  %v270_v9 = vand.u32 4294901760, %v269_v8  ;;  %v277_v10 = vand.u32 4294901760, %v276_v22  ;;  %v296_v12 = vand.u32 4294901760, %v1582_v54  ;;  %v1662_v14 = vpack.c.bf16 %v151_v47, %v148_v39 }
  0x61   :  { %v284_v15 = vand.u32 4294901760, %v283_v38  ;;  %v290_v32 = vsub.f32 %v1568_v48, %v289_v11  ;;  %v303_v47 = vand.u32 4294901760, %v1591_v58  ;;  %v310_v51 = vand.u32 4294901760, %v1596_v59 }
  0x62   :  { %v1665_v21 = vpack.c.bf16 %v270_v9, %v263_v26  ;;  %v1667_v30 = vpack.c.bf16 %v296_v12, %v289_v11  ;;  %v297_v33 = vsub.f32 %v1582_v54, %v296_v12  ;;  %v1682_v52 = vpack.c.bf16 %v157_v50, %v154_v49 }
  0x63   :  { %1203 = vmatpush3.bf16.msra.mxu0 %v1637_v62  ;;  %1131 = vmatpush3.bf16.msra.mxu1 %v1637_v62  ;;  %v1673_v27 = vpack.c.bf16 %v284_v15, %v277_v10  ;;  %v291_v35 = vand.u32 4294901760, %v290_v32  ;;  %v1687_v56 = vpack.c.bf16 %v310_v51, %v303_v47  ;;  %v304_v61 = vsub.f32 %v1591_v58, %v303_v47 }
  0x64   :  { %1204 = vmatprep.subr.bf16.mxu0 %v1410_v0  ;;  %1132 = vmatprep.subr.bf16.mxu1 %v1410_v0  ;;  %v298_v39 = vand.u32 4294901760, %v297_v33  ;;  %v311_v4 = vsub.f32 %v1596_v59, %v310_v51  ;;  %v1163_v50 = vpack.c.bf16 %v1511_v18, %v1509_v17  ;;  %v1166_v5 = vpack.c.bf16 %v1517_v24, %v1515_v23  ;;  %v89_v33 = vld [vmem:[#allocation7] sm:$0xff] }
  0x65   :  { %v305_v40 = vand.u32 4294901760, %v304_v61  ;;  %v1169_v8 = vpack.c.bf16 %v1529_v29, %v1519_v25  ;;  %v1172_v22 = vpack.c.bf16 %v1539_v37, %v1537_v36  ;;  %v1175_v26 = vpack.c.bf16 %v1551_v44, %v1549_v43 }
  0x66   :  { %v1685_v55 = vpack.c.bf16 %v298_v39, %v291_v35  ;;  %v312_v41 = vand.u32 4294901760, %v311_v4  ;;  %v1178_v38 = vpack.c.bf16 %v1562_v46, %v1557_v45  ;;  %v1181_v9 = vpack.c.bf16 %v1582_v54, %v1568_v48 }
  0x67   :  { %1206 = vmatpush3.bf16.msra.mxu0 %v1662_v14  ;;  %1134 = vmatpush3.bf16.msra.mxu1 %v1662_v14  ;;  %v1184_v10 = vpack.c.bf16 %v1596_v59, %v1591_v58  ;;  %vm106_vm2 = vcmask 523264   ;;  %vm108_vm3 = vcmask 785408   ;;  %v84_v18 = vlaneseq }
  0x68   :  { %1207 = vmatprep.subr.bf16.mxu0 %v1410_v0  ;;  %1135 = vmatprep.subr.bf16.mxu1 %v1410_v0  ;;  %v1160_v49 = vpack.c.bf16 %v312_v41, %v305_v40 }
  0x69   :  { %v85_v24 = vand.u32 127, %v84_v18 }
  0x6b   :  { %1209 = vmatpush3.bf16.msra.mxu0 %v1682_v52  ;;  %1137 = vmatpush3.bf16.msra.mxu1 %v1682_v52  ;;  %vm86_vm4 = vcmp.lt.s32.totalorder %v85_v24, 4 }
  0x6c   :  { %1210 = vmatprep.subr.bf16.mxu0 %v1410_v0  ;;  %1138 = vmatprep.subr.bf16.mxu1 %v1410_v0 }
  0xbe   :  { %v97_v11 = vpop.permute.xlu0 %96  ;;  %v103_v12 = vpop.permute.xlu1 %102 }
  0xbf   :  { %v105_v15 = vsel %vm91_vm1, %v1503_v2, %v97_v11 }
  0xc2   :  { %v100_v32 = vpop.permute.xlu0 %99 }
  0xc3   :  { %v107_v35 = vsel %vm106_vm2, %v105_v15, %v100_v32 }
  0xc4   :  { %v109_v39 = vsel %vm108_vm3, %v107_v35, %v103_v12 }
  0xc5   :  { %v110_v47 = vmul.f32 %v109_v39, %v89_v33 }
  0xc7   :  { %v1716_v51 = vand.u32 4294901760, %v110_v47 }
  0xc9   :  { %v1719_v61 = vsub.f32 %v110_v47, %v1716_v51 }
  0xcb   :  { %v194_v4 = vand.u32 4294901760, %v1719_v61 }
  0xcd   :  { %1042 = vmatmul.mubr.f32.vlgmr.msra.gmra.mrb[0].mxu0 %v194_v4  ;;  %v195_v40 = vsub.f32 %v1719_v61, %v194_v4 }
  0xce   :  { %1212 = vmatpush3.bf16.msra.mxu0 %v1598_v60  ;;  %1076 = vmatprep.mubr.msk.f32.mxu0 %vm1411_vm0, %v1412_v1 }
  0xcf   :  { %1213 = vmatprep.subr.bf16.mxu0 %v1410_v0  ;;  %v196_v41 = vand.u32 4294901760, %v195_v40 }
  0xd1   :  { %937 = vmatmul.mubr.f32.vlgmr.msra.gmra.mrb[0].mxu1 %v196_v41 }
  0xd2   :  { %1140 = vmatpush3.bf16.msra.mxu1 %v1619_v19  ;;  %1215 = vmatpush3.bf16.msra.mxu0 %v1603_v63 }
  0xd3   :  { %1141 = vmatprep.subr.bf16.mxu1 %v1410_v0  ;;  %1216 = vmatprep.subr.bf16.mxu0 %v1410_v0 }
  0xd4   :  { %971 = vmatprep.mubr.msk.f32.mxu1 %vm1411_vm0, %v1412_v1 }
  0xd6   :  { %1143 = vmatpush3.bf16.msra.mxu1 %v1627_v31  ;;  %1218 = vmatpush3.bf16.msra.mxu0 %v1614_v13 }
  0xd7   :  { %1144 = vmatprep.subr.bf16.mxu1 %v1410_v0  ;;  %1219 = vmatprep.subr.bf16.mxu0 %v1410_v0 }
  0xda   :  { %1146 = vmatpush3.bf16.msra.mxu1 %v1639_v3  ;;  %1221 = vmatpush3.bf16.msra.mxu0 %v1621_v20 }
  0xdb   :  { %1147 = vmatprep.subr.bf16.mxu1 %v1410_v0  ;;  %1222 = vmatprep.subr.bf16.mxu0 %v1410_v0 }
  0xde   :  { %1149 = vmatpush3.bf16.msra.mxu1 %v1644_v6  ;;  %1224 = vmatpush3.bf16.msra.mxu0 %v1646_v7 }
  0xdf   :  { %1150 = vmatprep.subr.bf16.mxu1 %v1410_v0  ;;  %1225 = vmatprep.subr.bf16.mxu0 %v1410_v0 }
  0xe2   :  { %1152 = vmatpush3.bf16.msra.mxu1 %v1665_v21  ;;  %1227 = vmatpush3.bf16.msra.mxu0 %v1652_v34 }
  0xe3   :  { %1153 = vmatprep.subr.bf16.mxu1 %v1410_v0  ;;  %1228 = vmatprep.subr.bf16.mxu0 %v1410_v0 }
  0xe6   :  { %1155 = vmatpush3.bf16.msra.mxu1 %v1673_v27  ;;  %1230 = vmatpush3.bf16.msra.mxu0 %v1667_v30 }
  0xe7   :  { %1156 = vmatprep.subr.bf16.mxu1 %v1410_v0  ;;  %1231 = vmatprep.subr.bf16.mxu0 %v1410_v0 }
  0xea   :  { %1158 = vmatpush3.bf16.msra.mxu1 %v1685_v55  ;;  %1233 = vmatpush3.bf16.msra.mxu0 %v1687_v56 }
  0xeb   :  { %1159 = vmatprep.subr.bf16.mxu1 %v1410_v0  ;;  %1234 = vmatprep.subr.bf16.mxu0 %v1410_v0 }
  0xed   :  { %1077 = vmatmul.mubr.f32.vlgmr.msra.gmra.mrb[0].mxu0 %v1716_v51 }
  0xee   :  { %1161 = vmatpush3.bf16.msra.mxu1 %v1160_v49  ;;  %1236 = vmatpush3.bf16.msra.mxu0 %v1507_v16 }
  0xef   :  { %1162 = vmatprep.subr.bf16.mxu1 %v1410_v0  ;;  %1237 = vmatprep.subr.bf16.mxu0 %v1410_v0 }
  0xf0   :  { %1111 = vmatprep.mubr.msk.f32.mxu0 %vm1411_vm0, %v1412_v1 }
  0xf1   :  { %972 = vmatmul.mubr.f32.vlgmr.msra.gmra.mrb[0].mxu1 %v1716_v51 }
  0xf2   :  { %1164 = vmatpush3.bf16.msra.mxu1 %v1163_v50  ;;  %1239 = vmatpush3.bf16.msra.mxu0 %v1527_v28 }
  0xf3   :  { %1165 = vmatprep.subr.bf16.mxu1 %v1410_v0  ;;  %1240 = vmatprep.subr.bf16.mxu0 %v1410_v0 }
  0xf4   :  { %1006 = vmatprep.mubr.msk.f32.mxu1 %vm1411_vm0, %v1412_v1  ;;  %v88_v1 = vld [vmem:[#allocation5] sm:$0xff] }
  0xf5   :  { %v90_v16 = vmul.f32 %v88_v1, %v1503_v2 }
  0xf6   :  { %1167 = vmatpush3.bf16.msra.mxu1 %v1166_v5  ;;  %1242 = vmatpush3.bf16.msra.mxu0 %v1547_v42 }
  0xf7   :  { %1168 = vmatprep.subr.bf16.mxu1 %v1410_v0  ;;  %1243 = vmatprep.subr.bf16.mxu0 %v1410_v0  ;;  %v92_v17 = vsel %vm91_vm1, %v90_v16, 0.0 }
  0xf8   :  { %93 = vadd.xlane.f32.xlu1 %v92_v17 }
  0xfa   :  { %1170 = vmatpush3.bf16.msra.mxu1 %v1169_v8  ;;  %1245 = vmatpush3.bf16.msra.mxu0 %v1577_v53 }
  0xfb   :  { %1171 = vmatprep.subr.bf16.mxu1 %v1410_v0  ;;  %1246 = vmatprep.subr.bf16.mxu0 %v1410_v0 }
  0xfe   :  { %1173 = vmatpush3.bf16.msra.mxu1 %v1172_v22  ;;  %1248 = vmatpush3.bf16.msra.mxu0 %v1586_v57 }
  0xff   :  { %1174 = vmatprep.subr.bf16.mxu1 %v1410_v0  ;;  %1249 = vmatprep.subr.bf16.mxu0 %v1410_v0 }
 0x102   :  { %1176 = vmatpush3.bf16.msra.mxu1 %v1175_v26  ;;  %1251 = vmatpush3.bf16.msra.mxu0 %v1637_v62 }
 0x103   :  { %1177 = vmatprep.subr.bf16.mxu1 %v1410_v0  ;;  %1252 = vmatprep.subr.bf16.mxu0 %v1410_v0 }
 0x106   :  { %1179 = vmatpush3.bf16.msra.mxu1 %v1178_v38  ;;  %1254 = vmatpush3.bf16.msra.mxu0 %v1662_v14 }
 0x107   :  { %1180 = vmatprep.subr.bf16.mxu1 %v1410_v0  ;;  %1255 = vmatprep.subr.bf16.mxu0 %v1410_v0 }
 0x10a   :  { %1182 = vmatpush3.bf16.msra.mxu1 %v1181_v9  ;;  %1257 = vmatpush3.bf16.msra.mxu0 %v1682_v52 }
 0x10b   :  { %1183 = vmatprep.subr.bf16.mxu1 %v1410_v0 }
 0x10d   :  { %1112 = vmatmul.mubr.f32.vlgmr.msra.gmra.mrb[0].mxu0 %v1716_v51 }
 0x10e   :  { %1185 = vmatpush3.bf16.msra.mxu1 %v1184_v10 }
 0x111   :  { %1007 = vmatmul.mubr.f32.vlgmr.msra.gmra.mrb[0].mxu1 %v1719_v61 }
 0x185   :  { %v94_v37 = vpop.xlane.xlu1 %93 }
 0x186   :  { %v765_v58 = vsub.f32 0.0, %v94_v37 }
 0x1e0   :  { %v748_v23 = vpop.f32.mrb[0].mxu0 }
 0x1e1   :  { %v1113_v25 = vpop.f32.mrb[1].mxu0 }
 0x1e4   :  { %v453_v28 = vpop.f32.mrb[0].mxu1 }
 0x1e5   :  { %v1258_v0 = vadd.f32 %v748_v23, %v453_v28  ;;  %v1008_v29 = vpop.f32.mrb[1].mxu1 }
 0x1e7   :  { %v752_v36 = vsel %vm86_vm4, %v1258_v0, -inf }
 0x1e8   :  { %753 = vmax.xlane.f32.xlu0 %v752_v36 }
 0x275   :  { %v754_v42 = vpop.xlane.xlu0 %753 }
 0x276   :  { %v755_v43 = vmax.f32 %v94_v37, %v754_v42 }
 0x278   :  { %v759_v44 = vsub.f32 %v752_v36, %v755_v43  ;;  %v756_v46 = vsub.f32 %v94_v37, %v755_v43  ;;  %v766_v60 = vadd.f32 %v765_v58, %v755_v43 }
 0x27a   :  { %v760_v45 = vmul.f32 1.442695, %v759_v44  ;;  %v757_v48 = vmul.f32 1.442695, %v756_v46 }
 0x27c   :  { %1280 = vpow2.f32 %v760_v45 }
 0x27d   :  { %1282 = vpow2.f32 %v757_v48 }
 0x286   :  { %v1281_v2 = vpop.eup %1280 }
 0x287   :  { %762 = vadd.xlane.f32.xlu0 %v1281_v2  ;;  %v1283_v53 = vpop.eup %1282 }
 0x314   :  { %v763_v54 = vpop.xlane.xlu0 %762 }
 0x315   :  { %v764_v57 = vadd.f32 %v1283_v53, %v763_v54 }
 0x317   :  { %1284 = vlog2.f32 %v764_v57 }
 0x321   :  { %v1285_v59 = vpop.eup %1284 }
 0x322   :  { %v768_v63 = vmul.f32 0.6931472, %v1285_v59 }
 0x324   :  { %v769_v13 = vadd.f32 %v768_v63, %v766_v60 }
 0x326   :  { %v777_v19 = vrot.slane %v769_v13, 4 }
 0x328   :  { %v778_v20 = vadd.f32 %v777_v19, %v769_v13 }
 0x32a   :  { %v779_v31 = vrot.slane %v778_v20, 2 }
 0x32c   :  { %v780_v62 = vadd.f32 %v779_v31, %v778_v20 }
 0x32e   :  { %v781_v3 = vrot.slane %v780_v62, 1 }
 0x330   :  { %v782_v6 = vadd.f32 %v781_v3, %v780_v62 }
 0x332   :  { %784 = vst [vmem:[#allocation10] sm:$0xff] %v782_v6 }
 0x333   :  { %1385 = shalt.err (!%p1382_p8)
}
 0x334   :  { %s1386_s16 = scalar_lea.hbm %s1830_s4, 128 }
 0x335   :  { %p1387_p9 = scmp.ne.s32.totalorder %s1830_s4, %s1386_s16  ;;  %p1390_p10 = scmp.lt.u32.totalorder %s1386_s16, %s1830_s4 }
 0x337   :  { %p1392_p11 = pnand %p1390_p10, %p1387_p9 }
 0x339   :  { %1395 = shalt.err (!%p1392_p11)
}
 0x33a   :  { %794 = dma.vmem_to_hbm [thread:$0]  %s792_s12, 128, %s1830_s4, [#allocation4]  }
 0x33b   :  { %1402 = dma.done.wait [#allocation4], 128  }
 0x33c   :  { %1403 = vsyncadd [#allocation4], 4294967168 }
 0x33d   :  { %798 = vsyncpa [#allocation3], 1 }
 0x33e   :  { %799 = vsyncpa [#allocation6], 1 }
 0x33f   :  { %800 = vsyncpa [#allocation9], 1 }
 0x340   :  { %801 = vsyncpa [#allocation4], 1 }

</bundles_post_ra>
